<compile_context>
chip_gen: v7x
topology: tpu7x:2x2x1
jax: 0.10.0
libtpu: 0.0.40
codegen_flags: <defaults>
</compile_context>

<pallas_src>
import jax
import jax.numpy as jnp
from jax.experimental import pallas as pl
from jax.experimental.pallas import tpu as pltpu


def _round_up(v, m):
    return (v + m - 1) // m * m


def _cdiv(a, b):
    return (a + b - 1) // b


def _make_kernel(n_rows, tile_n, band):
    """Kernel closure over static sizes (true row count, N tile, graph band)."""

    def kernel(x_ref, seg_ref, w_ref, b_ref, o_ref, segx_ref, cnt_ref):
        j = pl.program_id(0)          # graph-band axis ("parallel", size core_splits)
        i = pl.program_id(1)          # node-tile axis ("arbitrary" reduction)

        # Resident per-band accumulators: zero them on the first N-tile.
        @pl.when(i == 0)
        def _init():
            segx_ref[...] = jnp.zeros_like(segx_ref)
            cnt_ref[...] = jnp.zeros_like(cnt_ref)
            o_ref[...] = jnp.zeros_like(o_ref)

        # Mask rows past the true node count (ragged last tile).  Garbage rows
        # must be zeroed *before* the matmul (0 * Inf/NaN would be NaN).
        row = jax.lax.broadcasted_iota(jnp.int32, (tile_n, 1), 0) + i * tile_n
        x = jnp.where(row < n_rows, x_ref[...], 0.0)            # [TN, F] f32
        x = x.astype(jnp.bfloat16)                              # MXU operand

        # Per-tile one-hot over this band's graph ids (0/1 exact in bf16).
        seg = seg_ref[...]                                      # [1, TN] int32
        gid = jax.lax.broadcasted_iota(jnp.int32, (band, tile_n), 0) + j * band
        hit = gid == seg                                        # [band, TN] bool
        onehot = hit.astype(jnp.bfloat16)

        # Scatter-sum of raw features (MXU, K = TN) + per-graph node counts.
        segx_ref[...] += jnp.dot(onehot, x, preferred_element_type=jnp.float32)
        cnt_ref[...] += jnp.sum(hit.astype(jnp.float32), axis=1, keepdims=True)

        # Apply the folded Linear exactly once, after the whole reduction.
        @pl.when(i == pl.num_programs(1) - 1)
        def _finalize():
            o_ref[...] = (
                jnp.dot(segx_ref[...], w_ref[...],
                        preferred_element_type=jnp.float32)
                + cnt_ref[...] * b_ref[...]
            )

    return kernel


def graph_cp_pooling(x, batch, weight_t, bias, num_graphs, *,
                     tile_n=1024, core_splits=1):
    """Forward pass of graph_cp_pooling.

    x:          [N, F]    float  node features
    batch:      [N]       int    graph id per node, values in [0, num_graphs)
    weight_t:   [F+1, Fo] float  Linear weight, transposed; last row multiplies
                                 the appended ones column
    bias:       [Fo]      float
    num_graphs: static python int (avoids a device->host sync on batch.max())
    tile_n:     nodes per grid step (multiple of 128; 256+ recommended on
                v6e/v7x).  VMEM use stays tiny at the default.
    core_splits: number of "parallel" graph bands.  Set 2 on v7x (2 TCs/chip);
                 keep 1 on v5e/v6e (each extra split re-reads x from HBM).
    """
    n, f = x.shape
    fo = weight_t.shape[1]
    g = int(num_graphs)

    # Lane/sublane-friendly padded sizes.
    band = _round_up(_cdiv(g, core_splits), 8)      # graphs per band (sublanes)
    gp = band * core_splits                         # padded number of graphs
    fop = _round_up(fo, 128)                        # lane-dense output columns

    tn = _round_up(min(int(tile_n), _round_up(n, 128)), 128)   # N tile
    n_tiles = _cdiv(n, tn)
    n_pad = n_tiles * tn

    # Fold the ones-column row of the weight and the bias into b_eff:
    #   out[g] = segsum_x[g] @ W[:F] + count[g] * (W[F] + bias)
    w_eff = weight_t[:f, :].astype(jnp.float32)
    b_eff = (weight_t[f, :] + bias).astype(jnp.float32)
    w_pad = jnp.pad(w_eff, ((0, 0), (0, fop - fo)))
    b_pad = jnp.pad(b_eff, (0, fop - fo)).reshape(1, fop)

    # Only `batch` is padded (cheap int32); padded ids are out of range so
    # their one-hot columns are all zero.  x is NOT copied/padded (the ragged
    # last tile is masked in-kernel), except for the tiny n < tn case where a
    # one-tile pad keeps every block inside the array bounds.
    x = x.astype(jnp.float32)
    if n < tn:
        x = jnp.pad(x, ((0, tn - n), (0, 0)))
    batch2d = jnp.pad(batch.astype(jnp.int32), (0, n_pad - n),
                      constant_values=gp).reshape(1, n_pad)

    kernel = _make_kernel(n, tn, band)

    out = pl.pallas_call(
        kernel,
        out_shape=jax.ShapeDtypeStruct((gp, fop), jnp.float32),
        grid_spec=pltpu.PrefetchScalarGridSpec(
            num_scalar_prefetch=0,
            grid=(core_splits, n_tiles),
            in_specs=[
                pl.BlockSpec((tn, f), lambda j, i: (i, 0)),    # x tile (pipelined)
                pl.BlockSpec((1, tn), lambda j, i: (0, i)),    # graph-id tile
                pl.BlockSpec((f, fop), lambda j, i: (0, 0)),   # W_eff (resident)
                pl.BlockSpec((1, fop), lambda j, i: (0, 0)),   # b_eff (resident)
            ],
            out_specs=pl.BlockSpec((band, fop), lambda j, i: (j, 0)),
            scratch_shapes=[
                pltpu.VMEM((band, f), jnp.float32),   # per-graph sum of x
                pltpu.VMEM((band, 1), jnp.float32),   # per-graph node count
            ],
        ),
        compiler_params=pltpu.CompilerParams(
            dimension_semantics=("parallel", "arbitrary"),
        ),
    )(x, batch2d, w_pad, b_pad)

    return out[:g, :fo]


if __name__ == "__main__":
    key = jax.random.PRNGKey(0)
    N, F = 200, 32          # 200 nodes, out_feats = 32 (exercises the ragged tile mask)
    Fo = F                  # Linear(out_feats + 1, out_feats)
    G = 4                   # graphs in the batch (50 nodes each)

    kx, kw, kb = jax.random.split(key, 3)
    x = jax.random.normal(kx, (N, F), dtype=jnp.float32)
    batch = jnp.repeat(jnp.arange(G, dtype=jnp.int32), N // G)   # sorted, PyG-style

    # deterministic Linear(F+1, Fo) init (PyTorch-style uniform +-1/sqrt(fan_in))
    bound = 1.0 / jnp.sqrt(jnp.float32(F + 1))
    weight_t = jax.random.uniform(kw, (F + 1, Fo), jnp.float32, -bound, bound)
    bias = jax.random.uniform(kb, (Fo,), jnp.float32, -bound, bound)

    out = graph_cp_pooling(x, batch, weight_t, bias, num_graphs=G)
    out = jax.block_until_ready(out)

    # Pure-JAX reference.  The kernel feeds the MXU bf16 copies of x, so the
    # reference quantizes x the same way (one-hot / accumulation stay f32).
    x_q = x.astype(jnp.bfloat16).astype(jnp.float32)
    ones = jnp.ones((N, 1), jnp.float32)
    fea_ref = jnp.dot(jnp.concatenate([x_q, ones], axis=1), weight_t,
                      precision=jax.lax.Precision.HIGHEST) + bias
    ref = jax.ops.segment_sum(fea_ref, batch, num_segments=G)

    assert out.shape == (G, Fo)
    err = float(jnp.max(jnp.abs(out - ref)))
    assert err < 3e-2, f"max abs err {err}"
    print("KERNEL_OK")
</pallas_src>

<mosaic_0001>
module attributes {stable_mosaic.version = 11 : i64} {
  func.func @kernel(%arg0: i32, %arg1: i32, %arg2: memref<256x32xf32, #tpu.memory_space<vmem>>, %arg3: memref<1x256xi32, #tpu.memory_space<vmem>>, %arg4: memref<32x128xf32, #tpu.memory_space<vmem>>, %arg5: memref<1x128xf32, #tpu.memory_space<vmem>>, %arg6: memref<8x128xf32, #tpu.memory_space<vmem>>, %arg7: memref<8x32xf32, #tpu.memory_space<vmem>>, %arg8: memref<8x1xf32, #tpu.memory_space<vmem>>) attributes {dimension_semantics = [#tpu.dimension_semantics<parallel>, #tpu.dimension_semantics<arbitrary>], iteration_bounds = array<i64: 1, 1>, scalar_prefetch = 0 : i64, scratch_operands = 2 : i64, tpu.core_type = #tpu.core_type<tc>, window_params = [{transform_indices = @transform_0, window_bounds = array<i64: 256, 32>}, {transform_indices = @transform_1, window_bounds = array<i64: 1, 256>}, {pipeline_mode = #tpu.pipeline_mode<synchronous>, transform_indices = @transform_2, window_bounds = array<i64: 32, 128>}, {pipeline_mode = #tpu.pipeline_mode<synchronous>, transform_indices = @transform_3, window_bounds = array<i64: 1, 128>}, {transform_indices = @transform_4, window_bounds = array<i64: 8, 128>}]} {
    %c0_i32 = arith.constant 0 : i32
    %0 = arith.cmpi eq, %arg1, %c0_i32 : i32
    %1 = arith.extui %0 : i1 to i32
    %c0_i32_0 = arith.constant 0 : i32
    %2 = arith.cmpi ne, %1, %c0_i32_0 : i32
    scf.if %2 {
      %cst_16 = arith.constant 0.000000e+00 : f32
      %39 = vector.broadcast %cst_16 : f32 to vector<8x32xf32>
      %c0_17 = arith.constant 0 : index
      %c0_18 = arith.constant 0 : index
      %40 = vector.load %arg7[%c0_17, %c0_18] : memref<8x32xf32, #tpu.memory_space<vmem>>, vector<8x32xf32>
      tpu.vector_store %arg7[%c0_17, %c0_18], %39 {strides = array<i32>} : memref<8x32xf32, #tpu.memory_space<vmem>>, vector<8x32xf32>,
      %cst_19 = arith.constant 0.000000e+00 : f32
      %41 = vector.broadcast %cst_19 : f32 to vector<8x1xf32>
      %c0_20 = arith.constant 0 : index
      %c0_21 = arith.constant 0 : index
      %42 = vector.load %arg8[%c0_20, %c0_21] : memref<8x1xf32, #tpu.memory_space<vmem>>, vector<8x1xf32>
      tpu.vector_store %arg8[%c0_20, %c0_21], %41 {strides = array<i32>} : memref<8x1xf32, #tpu.memory_space<vmem>>, vector<8x1xf32>,
      %cst_22 = arith.constant 0.000000e+00 : f32
      %43 = vector.broadcast %cst_22 : f32 to vector<8x128xf32>
      %c0_23 = arith.constant 0 : index
      %c0_24 = arith.constant 0 : index
      %44 = vector.load %arg6[%c0_23, %c0_24] : memref<8x128xf32, #tpu.memory_space<vmem>>, vector<8x128xf32>
      tpu.vector_store %arg6[%c0_23, %c0_24], %43 {strides = array<i32>} : memref<8x128xf32, #tpu.memory_space<vmem>>, vector<8x128xf32>,
    } else {
    }
    %3 = tpu.iota {dimensions = array<i32: 0>} : vector<256x1xi32>
    %c256_i32 = arith.constant 256 : i32
    %4 = arith.muli %arg1, %c256_i32 : i32
    %5 = vector.broadcast %4 : i32 to vector<256x1xi32>
    %6 = arith.addi %3, %5 : vector<256x1xi32>
    %c200_i32 = arith.constant 200 : i32
    %7 = vector.broadcast %c200_i32 : i32 to vector<256x1xi32>
    %8 = arith.cmpi slt, %6, %7 : vector<256x1xi32>
    %c0 = arith.constant 0 : index
    %c0_1 = arith.constant 0 : index
    %9 = vector.load %arg2[%c0, %c0_1] : memref<256x32xf32, #tpu.memory_space<vmem>>, vector<256x32xf32>
    %cst = arith.constant 0.000000e+00 : f32
    %10 = vector.shape_cast %8 : vector<256x1xi1> to vector<256x1xi1>
    %11 = vector.broadcast %10 : vector<256x1xi1> to vector<256x32xi1>
    %12 = vector.broadcast %cst : f32 to vector<256x32xf32>
    %13 = arith.select %11, %9, %12 : vector<256x32xi1>, vector<256x32xf32>
    %14 = arith.truncf %13 : vector<256x32xf32> to vector<256x32xbf16>
    %c0_2 = arith.constant 0 : index
    %c0_3 = arith.constant 0 : index
    %15 = vector.load %arg3[%c0_2, %c0_3] : memref<1x256xi32, #tpu.memory_space<vmem>>, vector<1x256xi32>
    %16 = tpu.iota {dimensions = array<i32: 0>} : vector<8x256xi32>
    %c8_i32 = arith.constant 8 : i32
    %17 = arith.muli %arg0, %c8_i32 : i32
    %18 = vector.broadcast %17 : i32 to vector<8x256xi32>
    %19 = arith.addi %16, %18 : vector<8x256xi32>
    %20 = vector.broadcast %15 : vector<1x256xi32> to vector<8x256xi32>
    %21 = arith.cmpi eq, %19, %20 : vector<8x256xi32>
    %22 = arith.extui %21 : vector<8x256xi1> to vector<8x256xi32>
    %23 = arith.sitofp %22 : vector<8x256xi32> to vector<8x256xf32>
    %24 = arith.truncf %23 : vector<8x256xf32> to vector<8x256xbf16>
    %c0_4 = arith.constant 0 : index
    %c0_5 = arith.constant 0 : index
    %25 = vector.load %arg7[%c0_4, %c0_5] : memref<8x32xf32, #tpu.memory_space<vmem>>, vector<8x32xf32>
    %cst_6 = arith.constant dense<0.000000e+00> : vector<8x32xf32>
    %26 = tpu.matmul %24, %14, %cst_6 {dimension_numbers = #tpu.dot_dimension_numbers<[1], [0], [0], [1], [0, 0, 1, 1], [], []>} : vector<8x256xbf16>, vector<256x32xbf16>, vector<8x32xf32> -> vector<8x32xf32>
    %27 = arith.addf %25, %26 : vector<8x32xf32>
    %c0_7 = arith.constant 0 : index
    %c0_8 = arith.constant 0 : index
    %28 = vector.load %arg7[%c0_7, %c0_8] : memref<8x32xf32, #tpu.memory_space<vmem>>, vector<8x32xf32>
    tpu.vector_store %arg7[%c0_7, %c0_8], %27 {strides = array<i32>} : memref<8x32xf32, #tpu.memory_space<vmem>>, vector<8x32xf32>,
    %c0_9 = arith.constant 0 : index
    %c0_10 = arith.constant 0 : index
    %29 = vector.load %arg8[%c0_9, %c0_10] : memref<8x1xf32, #tpu.memory_space<vmem>>, vector<8x1xf32>
    %30 = arith.extui %21 : vector<8x256xi1> to vector<8x256xi32>
    %31 = arith.sitofp %30 : vector<8x256xi32> to vector<8x256xf32>
    %cst_11 = arith.constant dense<0.000000e+00> : vector<8xf32>
    %32 = vector.multi_reduction <add>, %31, %cst_11 [1] : vector<8x256xf32> to vector<8xf32>
    %33 = vector.shape_cast %32 : vector<8xf32> to vector<8x1xf32>
    %34 = arith.addf %29, %33 : vector<8x1xf32>
    %c0_12 = arith.constant 0 : index
    %c0_13 = arith.constant 0 : index
    %35 = vector.load %arg8[%c0_12, %c0_13] : memref<8x1xf32, #tpu.memory_space<vmem>>, vector<8x1xf32>
    tpu.vector_store %arg8[%c0_12, %c0_13], %34 {strides = array<i32>} : memref<8x1xf32, #tpu.memory_space<vmem>>, vector<8x1xf32>,
    %c0_i32_14 = arith.constant 0 : i32
    %36 = arith.cmpi eq, %arg1, %c0_i32_14 : i32
    %37 = arith.extui %36 : i1 to i32
    %c0_i32_15 = arith.constant 0 : i32
    %38 = arith.cmpi ne, %37, %c0_i32_15 : i32
    scf.if %38 {
      %c0_16 = arith.constant 0 : index
      %c0_17 = arith.constant 0 : index
      %39 = vector.load %arg7[%c0_16, %c0_17] : memref<8x32xf32, #tpu.memory_space<vmem>>, vector<8x32xf32>
      %c0_18 = arith.constant 0 : index
      %c0_19 = arith.constant 0 : index
      %40 = vector.load %arg4[%c0_18, %c0_19] : memref<32x128xf32, #tpu.memory_space<vmem>>, vector<32x128xf32>
      %cst_20 = arith.constant dense<0.000000e+00> : vector<8x128xf32>
      %41 = tpu.matmul %39, %40, %cst_20 {dimension_numbers = #tpu.dot_dimension_numbers<[1], [0], [0], [1], [0, 0, 1, 1], [], []>} : vector<8x32xf32>, vector<32x128xf32>, vector<8x128xf32> -> vector<8x128xf32>
      %c0_21 = arith.constant 0 : index
      %c0_22 = arith.constant 0 : index
      %42 = vector.load %arg8[%c0_21, %c0_22] : memref<8x1xf32, #tpu.memory_space<vmem>>, vector<8x1xf32>
      %c0_23 = arith.constant 0 : index
      %c0_24 = arith.constant 0 : index
      %43 = vector.load %arg5[%c0_23, %c0_24] : memref<1x128xf32, #tpu.memory_space<vmem>>, vector<1x128xf32>
      %44 = vector.broadcast %42 : vector<8x1xf32> to vector<8x128xf32>
      %45 = vector.broadcast %43 : vector<1x128xf32> to vector<8x128xf32>
      %46 = arith.mulf %44, %45 : vector<8x128xf32>
      %47 = arith.addf %41, %46 : vector<8x128xf32>
      %c0_25 = arith.constant 0 : index
      %c0_26 = arith.constant 0 : index
      %48 = vector.load %arg6[%c0_25, %c0_26] : memref<8x128xf32, #tpu.memory_space<vmem>>, vector<8x128xf32>
      tpu.vector_store %arg6[%c0_25, %c0_26], %47 {strides = array<i32>} : memref<8x128xf32, #tpu.memory_space<vmem>>, vector<8x128xf32>,
    } else {
    }
    return
  }
  func.func @transform_0(%arg0: i32, %arg1: i32) -> (i32, i32) {
    %c0_i32 = arith.constant 0 : i32
    %c0_i32_0 = arith.constant 0 : i32
    return %arg1, %c0_i32 : i32, i32
  }
  func.func @transform_1(%arg0: i32, %arg1: i32) -> (i32, i32) {
    %c0_i32 = arith.constant 0 : i32
    %c0_i32_0 = arith.constant 0 : i32
    return %c0_i32, %arg1 : i32, i32
  }
  func.func @transform_2(%arg0: i32, %arg1: i32) -> (i32, i32) {
    %c0_i32 = arith.constant 0 : i32
    %c0_i32_0 = arith.constant 0 : i32
    %c0_i32_1 = arith.constant 0 : i32
    return %c0_i32, %c0_i32_0 : i32, i32
  }
  func.func @transform_3(%arg0: i32, %arg1: i32) -> (i32, i32) {
    %c0_i32 = arith.constant 0 : i32
    %c0_i32_0 = arith.constant 0 : i32
    %c0_i32_1 = arith.constant 0 : i32
    return %c0_i32, %c0_i32_0 : i32, i32
  }
  func.func @transform_4(%arg0: i32, %arg1: i32) -> (i32, i32) {
    %c0_i32 = arith.constant 0 : i32
    %c0_i32_0 = arith.constant 0 : i32
    return %arg0, %c0_i32 : i32, i32
  }
}

</mosaic_0001>

<bundles_post_ra>
// kernel: tpu_custom_call.1
= control target key start
LH: loop header
LB: loop body
LE: loop exit
PB: predicated region body
PF: predicated region fallthrough
CT: control target
= control target key end

     0   :  { %v28_v3 = vlaneseq  ;;  %vm23_vm0 = vcmask 261120   ;;  %v513_v4 = vmov 0   ;;  %v514_v7 = vmov 0.0   ;;  %s683_s0 = inlined_call_operand.vmem [shape: f32[256,32], index: 0, kind: input, shape index: {}]   ;;  %s684_s1 = inlined_call_operand.vmem [shape: s32[1,256], index: 1, kind: input, shape index: {}]   ;;  %s685_s2 = inlined_call_operand.vmem [shape: f32[32,128], index: 2, kind: input, shape index: {}]   ;;  %s686_s3 = inlined_call_operand.vmem [shape: f32[1,128], index: 3, kind: input, shape index: {}]   ;;  %s687_s4 = inlined_call_operand.hbm [shape: f32[8,128], index: 4, kind: output, shape index: {}]  }
   0x1   :  { %v127_v0 = vld [vmem:[%s683_s0] sm:$0xff]  ;;  %v128_v1 = vld [vmem:[%s683_s0 + $0x8] sm:$0xff]  ;;  %v129_v2 = vld [vmem:[%s683_s0 + $0x10] sm:$0xff]  ;;  %292 = vmatprep.subr.bf16.mxu0 %v513_v4  ;;  %24 = vst.msk [vmem:[#allocation2] sm:$0xff] %vm23_vm0, %v514_v7  ;;  %488 = vset.pattern.permute.xlu0 %v513_v4 }
   0x2   :  { %v255_v5 = vpack.c.bf16 %v128_v1, %v127_v0  ;;  %v130_v6 = vld [vmem:[%s683_s0 + $0x18] sm:$0xff]  ;;  %v560_v8 = vshrl.u32 %v28_v3, 7  ;;  %v131_v10 = vld [vmem:[%s683_s0 + $0x20] sm:$0xff]  ;;  %v132_v11 = vld [vmem:[%s683_s0 + $0x28] sm:$0xff] }
   0x3   :  { %v256_v9 = vpack.c.bf16 %v130_v6, %v129_v2  ;;  %v257_v14 = vpack.c.bf16 %v132_v11, %v131_v10  ;;  %v133_v15 = vld [vmem:[%s683_s0 + $0x30] sm:$0xff]  ;;  %v134_v16 = vld [vmem:[%s683_s0 + $0x38] sm:$0xff]  ;;  %v271_v17 = vld [vmem:[%s684_s1] sm:$0x3] }
   0x4   :  { %293 = vmatpush1.bf16.msra.mxu0 %v255_v5  ;;  %v277_v12 = vsub.s32 0, %v560_v8  ;;  %v281_v13 = vsub.s32 1, %v560_v8 }
   0x5   :  { %294 = vmatprep.subr.bf16.mxu0 %v513_v4 }
   0x6   :  { %v278_v18 = vrot.slane %v271_v17, %v277_v12  ;;  %v282_v19 = vrot.slane %v271_v17, %v281_v13 }
   0x8   :  { %295 = vmatpush1.bf16.msra.mxu0 %v256_v9 }
   0x9   :  { %296 = vmatprep.subr.bf16.mxu0 %v513_v4 }
   0xa   :  { %9 = vsyncpa [#allocation5], 0  ;;  %v258_v20 = vpack.c.bf16 %v134_v16, %v133_v15  ;;  %vm284_vm1 = vcmp.eq.s32.totalorder %v560_v8, %v282_v19  ;;  %vm283_vm2 = vcmp.eq.s32.totalorder %v560_v8, %v278_v18  ;;  %v135_v21 = vld [vmem:[%s683_s0 + $0x40] sm:$0xff]  ;;  %v136_v22 = vld [vmem:[%s683_s0 + $0x48] sm:$0xff]  ;;  %v515_v25 = vmov 1.0|1.0  }
   0xb   :  { %vm454_vm3 = vmpackc.low %vm284_vm1, %vm284_vm1  ;;  %v452_v23 = vsel %vm283_vm2, 1.0, %v514_v7  ;;  %v453_v24 = vsel %vm284_vm1, 1.0, %v514_v7  ;;  %v259_v27 = vpack.c.bf16 %v136_v22, %v135_v21  ;;  %v137_v28 = vld [vmem:[%s683_s0 + $0x50] sm:$0xff]  ;;  %v138_v29 = vld [vmem:[%s683_s0 + $0x58] sm:$0xff]  ;;  %v516_v54 = vmov 0.0|0.0   ;;  %s518_s21 = smov [#allocation4]  }
   0xc   :  { %297 = vmatpush1.bf16.msra.mxu0 %v257_v14  ;;  %455 = vmatprep.mubr.msk.bf16.mxu0 %vm454_vm3, %v515_v25  ;;  %v336_v26 = vadd.f32 %v453_v24, %v452_v23  ;;  %v260_v30 = vpack.c.bf16 %v138_v29, %v137_v28  ;;  %v139_v31 = vld [vmem:[%s683_s0 + $0x60] sm:$0xff]  ;;  %v140_v32 = vld [vmem:[%s683_s0 + $0x68] sm:$0xff]  ;;  %v141_v34 = vld [vmem:[%s683_s0 + $0x70] sm:$0xff]  ;;  %vm517_vm5 = vmmov 0   ;;  %vm25_vm6 = vcmask 7168   ;;  %s444_s22 = sshll.u32 %s518_s21, 4  ;;  %s445_s22 = int_to_ptr.vmem [resolvable:$true] %s444_s22 }
   0xd   :  { %298 = vmatprep.subr.bf16.mxu0 %v513_v4  ;;  %v261_v33 = vpack.c.bf16 %v140_v32, %v139_v31  ;;  %v142_v35 = vld [vmem:[%s683_s0 + $0x78] sm:$0xff]  ;;  %v143_v37 = vld [vmem:[%s683_s0 + $0x80] sm:$0xff]  ;;  %v144_v38 = vld [vmem:[%s683_s0 + $0x88] sm:$0xff]  ;;  %476 = vmatprep.subr.bf16.mxu1 %v516_v54  ;;  %26 = vst.msk [vmem:[#allocation3] sm:$0xff] %vm25_vm6, %v514_v7  ;;  %s489_s23 = scalar_lea.vmem %s445_s22, 128  ;;  %p494_p1 = scmp.lt.s32.totalorder %s445_s22, %s445_s22 }
   0xe   :  { %337 = vadd.xlane.f32.xlu0 %v336_v26  ;;  %v262_v36 = vpack.c.bf16 %v142_v35, %v141_v34  ;;  %v263_v39 = vpack.c.bf16 %v144_v38, %v143_v37  ;;  %v145_v40 = vld [vmem:[%s683_s0 + $0x90] sm:$0xff]  ;;  %v146_v41 = vld [vmem:[%s683_s0 + $0x98] sm:$0xff]  ;;  %v147_v43 = vld [vmem:[%s683_s0 + $0xa0] sm:$0xff]  ;;  %473 = vmatprep.mubr.msk.f32.mxu1 %vm517_vm5, %v514_v7  ;;  %p490_p0 = scmp.ne.s32.totalorder %s445_s22, %s489_s23  ;;  %p495_p2 = scmp.lt.s32.totalorder %s489_s23, %s489_s23 }
   0xf   :  { %v264_v42 = vpack.c.bf16 %v146_v41, %v145_v40  ;;  %v148_v44 = vld [vmem:[%s683_s0 + $0xa8] sm:$0xff]  ;;  %v149_v46 = vld [vmem:[%s683_s0 + $0xb0] sm:$0xff]  ;;  %v150_v47 = vld [vmem:[%s683_s0 + $0xb8] sm:$0xff] }
  0x10   :  { %299 = vmatpush1.bf16.msra.mxu0 %v258_v20  ;;  %v265_v45 = vpack.c.bf16 %v148_v44, %v147_v43  ;;  %v266_v48 = vpack.c.bf16 %v150_v47, %v149_v46  ;;  %v151_v49 = vld [vmem:[%s683_s0 + $0xc0] sm:$0xff]  ;;  %vm456_vm4 = vmpackc.low %vm283_vm2, %vm283_vm2  ;;  %v347_v52 = vld [vmem:[%s685_s2 + $0x8] sm:$0xff]  ;;  %p496_p3 = por %p495_p2, %p494_p1 }
  0x11   :  { %300 = vmatprep.subr.bf16.mxu0 %v513_v4  ;;  %v267_v50 = vpack.c.bf16 %v514_v7, %v151_v49  ;;  %v346_v51 = vld [vmem:[%s685_s2] sm:$0xff]  ;;  %v348_v55 = vld [vmem:[%s685_s2 + $0x10] sm:$0xff]  ;;  %v349_v56 = vld [vmem:[%s685_s2 + $0x18] sm:$0xff] }
  0x12   :  { %v477_v53 = vpack.c.bf16 %v347_v52, %v346_v51  ;;  %v480_v57 = vpack.c.bf16 %v349_v56, %v348_v55  ;;  %v291_v62 = vld [vmem:[#allocation2] sm:$0xff]  ;;  %p497_p4 = pnand %p496_p3, %p490_p0 }
  0x13   :  { %v458_v5 = vld [vmem:[%s686_s3] ss:$0 sm:$0xff] }
  0x14   :  { %301 = vmatpush1.bf16.msra.mxu0 %v259_v27  ;;  %478 = vmatpush3.bf16.msra.mxu1 %v477_v53  ;;  %v335_v59 = vld [vmem:[#allocation3] sm:$0xff] }
  0x15   :  { %302 = vmatprep.subr.bf16.mxu0 %v513_v4  ;;  %479 = vmatprep.subr.bf16.mxu1 %v516_v54 }
  0x18   :  { %303 = vmatpush1.bf16.msra.mxu0 %v260_v30  ;;  %481 = vmatpush3.bf16.msra.mxu1 %v480_v57 }
  0x19   :  { %304 = vmatprep.subr.bf16.mxu0 %v513_v4 }
  0x1c   :  { %305 = vmatpush1.bf16.msra.mxu0 %v261_v33 }
  0x1d   :  { %306 = vmatprep.subr.bf16.mxu0 %v513_v4 }
  0x20   :  { %307 = vmatpush1.bf16.msra.mxu0 %v262_v36 }
  0x21   :  { %308 = vmatprep.subr.bf16.mxu0 %v513_v4 }
  0x24   :  { %309 = vmatpush1.bf16.msra.mxu0 %v263_v39 }
  0x25   :  { %310 = vmatprep.subr.bf16.mxu0 %v513_v4 }
  0x28   :  { %311 = vmatpush1.bf16.msra.mxu0 %v264_v42 }
  0x29   :  { %312 = vmatprep.subr.bf16.mxu0 %v513_v4 }
  0x2c   :  { %313 = vmatpush1.bf16.msra.mxu0 %v265_v45 }
  0x2d   :  { %314 = vmatprep.subr.bf16.mxu0 %v513_v4 }
  0x30   :  { %315 = vmatpush1.bf16.msra.mxu0 %v266_v48 }
  0x31   :  { %316 = vmatprep.subr.bf16.mxu0 %v513_v4 }
  0x34   :  { %317 = vmatpush1.bf16.msra.mxu0 %v267_v50 }
  0x37   :  { %457 = vmatmul.mubr.msk.bf16.vlgmr.msra.gmra.mrb[0].mxu0 %vm456_vm4, %v515_v25 }
  0x9b   :  { %v338_v58 = vpop.xlane.xlu0 %337 }
  0x9c   :  { %v339_v60 = vadd.f32 %v338_v58, %v335_v59 }
  0x9e   :  { %341 = vst.msk [vmem:[#allocation3] sm:$0xff] %vm25_vm6, %v339_v60 }
  0xa5   :  { %v350_v61 = vld [vmem:[#allocation3] sm:$0xff] }
  0xa6   :  { %354 = vperm.xlu0 %488, %v350_v61  }
 0x10a   :  { %v326_v63 = vpop.f32.mrb[0].mxu0 }
 0x10b   :  { %v332_v0 = vadd.f32 %v326_v63, %v291_v62  ;;  %v328_v1 = vpop.f32.mrb[1].mxu0 }
 0x10c   :  { %v329_v2 = vpop.f32.mrb[2].mxu0 }
 0x10d   :  { %334 = vst.msk [vmem:[#allocation2] sm:$0xff] %vm23_vm0, %v332_v0  ;;  %v330_v3 = vpop.f32.mrb[3].mxu0 }
 0x114   :  { %v345_v4 = vld [vmem:[#allocation2] sm:$0xff] }
 0x115   :  { %474 = vmatmul.mubr.msk.f32.vlgmr.msra.gmra.mrb[0].mxu1 %vm23_vm0, %v345_v4 }
 0x125   :  { %v355_v6 = vpop.permute.xlu0 %354 }
 0x126   :  { %v363_v7 = vmul.f32 %v458_v5, %v355_v6 }
 0x1e8   :  { %v433_v8 = vpop.f32.mrb[0].mxu1 }
 0x1e9   :  { %v434_v9 = vadd.f32 %v433_v8, %v363_v7  ;;  %v475_v10 = vpop.f32.mrb[1].mxu1 }
 0x1eb   :  { %437 = vst [vmem:[#allocation4] sm:$0xff] %v434_v9 }
 0x1ec   :  { %500 = shalt.err (!%p497_p4)
}
 0x1ed   :  { %s501_s3 = scalar_lea.hbm %s687_s4, 128 }
 0x1ee   :  { %p502_p5 = scmp.ne.s32.totalorder %s687_s4, %s501_s3  ;;  %p505_p6 = scmp.lt.u32.totalorder %s501_s3, %s687_s4 }
 0x1f0   :  { %p507_p7 = pnand %p505_p6, %p502_p5 }
 0x1f2   :  { %510 = shalt.err (!%p507_p7)
}
 0x1f3   :  { %447 = dma.vmem_to_hbm [thread:$0]  %s445_s22, 128, %s687_s4, [#allocation5]  }
 0x1f4   :  { %511 = dma.done.wait [#allocation5], 128  }
 0x1f5   :  { %512 = vsyncadd [#allocation5], 4294967168 }
 0x1f6   :  { %451 = vsyncpa [#allocation5], 1 }

</bundles_post_ra>
